<compile_context>
chip_gen: v5e
topology: v5e:2x2
jax: 0.10.0
libtpu: 0.0.40
codegen_flags: <defaults>
</compile_context>

<pallas_src>
import functools

import jax
import jax.numpy as jnp
from jax.experimental import pallas as pl
from jax.experimental.pallas import tpu as pltpu


def _bce_with_logits(x, t):
    # Numerically stable BCE-with-logits, matches torch BCEWithLogitsLoss(reduction='none')
    return jnp.maximum(x, 0.0) - x * t + jnp.log1p(jnp.exp(-jnp.abs(x)))


def _loss_kernel(p_ref, t_ref, o_ref, *, n_valid, tile_rows, tiles_per_half):
    c = pl.program_id(0)   # half index ("parallel": maps to TensorCores on v7x)
    i = pl.program_id(1)   # row-tile within the half ("arbitrary": reduction)

    @pl.when(i == 0)
    def _init():
        o_ref[...] = jnp.zeros_like(o_ref)

    # Validity of rows in this tile (handles the partial last block and the
    # clamped/duplicated overflow block of the second half).
    tile_start = (c * tiles_per_half + i) * tile_rows
    rows_left = n_valid - tile_start                 # may be <= 0 on overflow tile

    row = jax.lax.broadcasted_iota(jnp.int32, (tile_rows, 1), 0)
    valid = row < rows_left                          # (TN, 1) bool
    valid_f = valid.astype(jnp.float32)

    # Load in native dtype, upcast after load.  Masking is mandatory here:
    # zero MXU weights would NOT neutralise NaN/Inf garbage rows (0*Inf = NaN).
    p = jnp.where(valid, p_ref[...].astype(jnp.float32), 0.0)   # (TN, D)
    t = jnp.where(valid, t_ref[...].astype(jnp.float32), 0.0)   # (TN, D)

    lane = jax.lax.broadcasted_iota(jnp.int32, p.shape, 1)

    # ---------------- box term, one lane-wide pass ----------------
    # Per-lane target permutation [t_y, t_y, t_w, t_h, ...]; only lanes 0..3 matter.
    # NB: lane 0 uses t_y, reproducing the reference module's  se(p_x, t_y)  quirk.
    t_box = jnp.where(lane == 0, t[:, 1:2], t)
    # sigmoid via EUP tanh (no full-precision VPU divide); applied only on lanes 0-1.
    sig_p = 0.5 * jnp.tanh(0.5 * p) + 0.5
    p_box = jnp.where(lane < 2, sig_p, p)
    se = (p_box - t_box) ** 2                        # (TN, D)

    # ------- objectness + class BCE in one wide pass over every channel -------
    bce = _bce_with_logits(p, t)                     # (TN, D); lanes 0..3 unused

    # Data matrix for the MXU row-reduction.
    x = jnp.where(lane < 4, se, bce)                 # (TN, D)

    # Weight matrix: col 0 = I_obj, col 1 = valid*(1 - I_obj).  Masked rows -> 0.
    i_obj = jnp.round(t[:, 4:5])                     # (TN, 1), {0, 1}
    noobj = valid_f - i_obj
    lane2 = jax.lax.broadcasted_iota(jnp.int32, (tile_rows, 2), 1)
    w = jnp.where(lane2 == 0, i_obj, noobj)          # (TN, 2)

    # All row reductions as a single skinny matmul contracting over rows (MXU).
    # HIGHEST precision keeps f32 accuracy (weights are exact 0/1 anyway).
    res = jax.lax.dot_general(
        w, x, (((0,), (0,)), ((), ())),
        preferred_element_type=jnp.float32,
        precision=jax.lax.Precision.HIGHEST)         # (2, D)

    # Stash the per-tile object count in an unused result slot (row 1, lane 0):
    # row 1 lanes 0..3 are noobj-weighted box terms we never read.
    cnt_obj = jnp.sum(i_obj)
    rr = jax.lax.broadcasted_iota(jnp.int32, res.shape, 0)
    ll = jax.lax.broadcasted_iota(jnp.int32, res.shape, 1)
    res = jnp.where(jnp.logical_and(rr == 1, ll == 0), cnt_obj, res)

    o_ref[...] += res[None]


def _default_num_halves():
    # 2 feeds both TensorCores on v7x; on single-TC chips (v5e/v6e) it costs at
    # most one duplicated, fully-masked tile, so 2 is a safe fallback.
    try:
        info = pltpu.get_tpu_info()
        for name in ("num_cores", "core_count", "num_tensorcores", "tensorcore_count"):
            v = getattr(info, name, None)
            if isinstance(v, int) and v > 0:
                return min(2, v)
    except Exception:
        pass
    return 2


def yolo_loss(pred, target, l_coord=1.0, l_object=1.0, l_noobj=0.5, l_class=1.0,
              tile_rows=4096, num_halves=None):
    assert pred.ndim == 5, "pred input size error."
    assert target.ndim == 5, "target input size error."
    assert pred.shape == target.shape, "shape of pred and target must be same."

    B, A, H, W, D = pred.shape
    N = B * A * H * W
    # Keep native dtype (no HBM-side f32 upcast) and do NOT pad (no extra HBM copies).
    p2 = pred.reshape(N, D)
    t2 = target.reshape(N, D)

    if N <= tile_rows:
        tr = N                              # single full-extent block (always legal)
    else:
        tr = max(8, (tile_rows // 8) * 8)   # multiple of 8 sublanes

    n_tiles = pl.cdiv(N, tr)
    if num_halves is None:
        num_halves = _default_num_halves()
    num_halves = max(1, min(num_halves, n_tiles))
    tiles_per_half = pl.cdiv(n_tiles, num_halves)

    def in_map(c, i):
        blk = c * tiles_per_half + i
        # Clamp the (possible) overflow block of the last half to a valid block;
        # its rows are fully masked out (zero weights) inside the kernel.
        return (jnp.minimum(blk, n_tiles - 1), 0)

    def out_map(c, i):
        return (c, 0, 0)

    kernel = functools.partial(
        _loss_kernel, n_valid=N, tile_rows=tr, tiles_per_half=tiles_per_half)

    itemsize = jnp.dtype(p2.dtype).itemsize
    lanes = 128 * pl.cdiv(D, 128)           # VMEM lane padding of the (tr, D) tiles
    vmem_limit = int(min(
        96 << 20,
        max(32 << 20,
            4 * tr * lanes * itemsize       # 2 inputs x 2 pipeline buffers
            + 10 * tr * lanes * 4           # f32 intermediates (estimate)
            + (2 << 20))))

    cost = pl.CostEstimate(
        flops=int(24 * N * D + 6 * 2 * N * D),   # VPU passes + HIGHEST-precision matmul
        transcendentals=int(3 * N * D),          # tanh + exp + log1p per element
        bytes_accessed=int(2 * N * D * itemsize))

    stats = pl.pallas_call(
        kernel,
        out_shape=jax.ShapeDtypeStruct((num_halves, 2, D), jnp.float32),
        grid=(num_halves, tiles_per_half),
        in_specs=[
            pl.BlockSpec((tr, D), in_map),
            pl.BlockSpec((tr, D), in_map),
        ],
        out_specs=pl.BlockSpec((1, 2, D), out_map),
        compiler_params=pltpu.CompilerParams(
            dimension_semantics=("parallel", "arbitrary"),
            vmem_limit_bytes=vmem_limit),
        cost_estimate=cost,
    )(p2, t2)

    s = jnp.sum(stats, axis=0)              # (2, D): combine the per-half partials
    sum_box = jnp.sum(s[0, 0:4])            # I_obj-weighted box squared errors
    sum_pobj = s[0, 4]                      # I_obj-weighted objectness BCE
    sum_cls = jnp.sum(s[0, 5:D]) / 80.0     # fixed /80 as in the reference
    sum_nobj = s[1, 4]                      # noobj-weighted objectness BCE
    cnt_obj = s[1, 0]                       # packed per-tile count slot
    cnt_noobj = jnp.float32(N) - cnt_obj    # every valid row is obj or noobj

    loss_box = l_coord * sum_box
    d1 = jnp.where(cnt_obj > 0, cnt_obj, 1.0)
    d2 = jnp.where(cnt_noobj > 0, cnt_noobj, 1.0)
    loss_obj = (sum_pobj / d1 + l_noobj * sum_nobj / d2) * l_object
    loss_cls = l_class * sum_cls
    total = loss_box + loss_obj + loss_cls
    return total, loss_box, loss_obj, loss_cls


def _ref_loss(pred, target, l_coord=1.0, l_object=1.0, l_noobj=0.5, l_class=1.0):
    # Pure-JAX transcription of the PyTorch module for verification.
    pred = pred.astype(jnp.float32)
    target = target.astype(jnp.float32)
    p_x = jax.nn.sigmoid(pred[..., 0]); p_y = jax.nn.sigmoid(pred[..., 1])
    p_w = pred[..., 2]; p_h = pred[..., 3]
    t_y = target[..., 1]; t_w = target[..., 2]; t_h = target[..., 3]
    total_se = (p_x - t_y) ** 2 + (p_y - t_y) ** 2 + (p_w - t_w) ** 2 + (p_h - t_h) ** 2
    i_obj = jnp.round(target[..., 4])
    loss_box = jnp.sum(i_obj * total_se) * l_coord

    p_c = pred[..., 4]; t_c = target[..., 4]
    i_noobj = 1.0 - i_obj
    bce_c = _bce_with_logits(p_c, t_c)
    s1 = jnp.sum(i_obj == 1.0); s2 = jnp.sum(i_obj == 0.0)
    lp = jnp.sum(i_obj * bce_c)
    ln = jnp.sum(l_noobj * i_noobj * bce_c)
    lp = jnp.where(s1 > 0, lp / s1, lp)
    ln = jnp.where(s2 > 0, ln / s2, ln)
    loss_obj = (lp + ln) * l_object

    bce_cls = _bce_with_logits(pred[..., 5:], target[..., 5:])
    loss_cls = jnp.sum(i_obj * (jnp.sum(bce_cls, axis=-1) / 80.0)) * l_class

    total = loss_box + loss_obj + loss_cls
    return total, loss_box, loss_obj, loss_cls


if __name__ == "__main__":
    key = jax.random.PRNGKey(0)
    kp, kt, kc = jax.random.split(key, 3)

    B, A, H, W, C = 2, 3, 4, 4, 80   # D = 5 + 80 = 85 (YOLO-style)
    D = 5 + C

    pred = jax.random.normal(kp, (B, A, H, W, D), dtype=jnp.float32)
    target = jax.random.uniform(kt, (B, A, H, W, D), dtype=jnp.float32)
    # make the confidence channel look like 0/1 objectness labels
    conf = (jax.random.uniform(kc, (B, A, H, W)) > 0.7).astype(jnp.float32)
    target = target.at[..., 4].set(conf)

    out = jax.block_until_ready(yolo_loss(pred, target))
    ref = jax.block_until_ready(_ref_loss(pred, target))

    for got, want in zip(out, ref):
        assert jnp.allclose(got, want, rtol=1e-5, atol=1e-5), (got, want)

    print("KERNEL_OK")
</pallas_src>

<mosaic_0001>
module attributes {stable_mosaic.version = 11 : i64} {
  func.func @_loss_kernel(%arg0: i32, %arg1: i32, %arg2: memref<96x85xf32, #tpu.memory_space<vmem>>, %arg3: memref<96x85xf32, #tpu.memory_space<vmem>>, %arg4: memref<1x2x85xf32, #tpu.memory_space<vmem>>) attributes {dimension_semantics = [#tpu.dimension_semantics<parallel>, #tpu.dimension_semantics<arbitrary>], iteration_bounds = array<i64: 1, 1>, scalar_prefetch = 0 : i64, scratch_operands = 0 : i64, tpu.core_type = #tpu.core_type<tc>, window_params = [{transform_indices = @transform_0, window_bounds = array<i64: 96, 85>}, {transform_indices = @transform_1, window_bounds = array<i64: 96, 85>}, {transform_indices = @transform_2, window_bounds = array<i64: 1, 2, 85>}]} {
    %c0_i32 = arith.constant 0 : i32
    %0 = arith.cmpi eq, %arg1, %c0_i32 : i32
    %1 = arith.extui %0 : i1 to i32
    %c0_i32_0 = arith.constant 0 : i32
    %2 = arith.cmpi ne, %1, %c0_i32_0 : i32
    scf.if %2 {
      %cst_23 = arith.constant 0.000000e+00 : f32
      %83 = vector.broadcast %cst_23 : f32 to vector<1x2x85xf32>
      %c0_24 = arith.constant 0 : index
      %c0_25 = arith.constant 0 : index
      %c0_26 = arith.constant 0 : index
      %84 = vector.load %arg4[%c0_24, %c0_25, %c0_26] : memref<1x2x85xf32, #tpu.memory_space<vmem>>, vector<1x2x85xf32>
      tpu.vector_store %arg4[%c0_24, %c0_25, %c0_26], %83 {strides = array<i32>} : memref<1x2x85xf32, #tpu.memory_space<vmem>>, vector<1x2x85xf32>,
    } else {
    }
    %c1_i32 = arith.constant 1 : i32
    %3 = arith.muli %arg0, %c1_i32 : i32
    %4 = arith.addi %3, %arg1 : i32
    %c96_i32 = arith.constant 96 : i32
    %5 = arith.muli %4, %c96_i32 : i32
    %c96_i32_1 = arith.constant 96 : i32
    %6 = arith.subi %c96_i32_1, %5 : i32
    %7 = tpu.iota {dimensions = array<i32: 0>} : vector<96x1xi32>
    %8 = vector.broadcast %6 : i32 to vector<96x1xi32>
    %9 = arith.cmpi slt, %7, %8 : vector<96x1xi32>
    %10 = arith.extui %9 : vector<96x1xi1> to vector<96x1xi32>
    %11 = arith.sitofp %10 : vector<96x1xi32> to vector<96x1xf32>
    %c0 = arith.constant 0 : index
    %c0_2 = arith.constant 0 : index
    %12 = vector.load %arg2[%c0, %c0_2] : memref<96x85xf32, #tpu.memory_space<vmem>>, vector<96x85xf32>
    %cst = arith.constant 0.000000e+00 : f32
    %13 = vector.shape_cast %9 : vector<96x1xi1> to vector<96x1xi1>
    %14 = vector.broadcast %13 : vector<96x1xi1> to vector<96x85xi1>
    %15 = vector.broadcast %cst : f32 to vector<96x85xf32>
    %16 = arith.select %14, %12, %15 : vector<96x85xi1>, vector<96x85xf32>
    %c0_3 = arith.constant 0 : index
    %c0_4 = arith.constant 0 : index
    %17 = vector.load %arg3[%c0_3, %c0_4] : memref<96x85xf32, #tpu.memory_space<vmem>>, vector<96x85xf32>
    %cst_5 = arith.constant 0.000000e+00 : f32
    %18 = vector.shape_cast %9 : vector<96x1xi1> to vector<96x1xi1>
    %19 = vector.broadcast %18 : vector<96x1xi1> to vector<96x85xi1>
    %20 = vector.broadcast %cst_5 : f32 to vector<96x85xf32>
    %21 = arith.select %19, %17, %20 : vector<96x85xi1>, vector<96x85xf32>
    %22 = tpu.iota {dimensions = array<i32: 1>} : vector<96x85xi32>
    %c0_i32_6 = arith.constant 0 : i32
    %23 = vector.broadcast %c0_i32_6 : i32 to vector<96x85xi32>
    %24 = arith.cmpi eq, %22, %23 : vector<96x85xi32>
    %25 = vector.extract_strided_slice %21 {offsets = [0, 1], sizes = [96, 1], strides = [1, 1]} : vector<96x85xf32> to vector<96x1xf32>
    %26 = vector.shape_cast %25 : vector<96x1xf32> to vector<96x1xf32>
    %27 = vector.broadcast %26 : vector<96x1xf32> to vector<96x85xf32>
    %28 = arith.select %24, %27, %21 : vector<96x85xi1>, vector<96x85xf32>
    %cst_7 = arith.constant 5.000000e-01 : f32
    %29 = vector.broadcast %cst_7 : f32 to vector<96x85xf32>
    %30 = arith.mulf %29, %16 : vector<96x85xf32>
    %31 = math.tanh %30 : vector<96x85xf32>
    %cst_8 = arith.constant 5.000000e-01 : f32
    %32 = vector.broadcast %cst_8 : f32 to vector<96x85xf32>
    %33 = arith.mulf %32, %31 : vector<96x85xf32>
    %cst_9 = arith.constant 5.000000e-01 : f32
    %34 = vector.broadcast %cst_9 : f32 to vector<96x85xf32>
    %35 = arith.addf %33, %34 : vector<96x85xf32>
    %c2_i32 = arith.constant 2 : i32
    %36 = vector.broadcast %c2_i32 : i32 to vector<96x85xi32>
    %37 = arith.cmpi slt, %22, %36 : vector<96x85xi32>
    %38 = arith.select %37, %35, %16 : vector<96x85xi1>, vector<96x85xf32>
    %39 = arith.subf %38, %28 : vector<96x85xf32>
    %40 = arith.mulf %39, %39 : vector<96x85xf32>
    %cst_10 = arith.constant 0.000000e+00 : f32
    %41 = vector.broadcast %cst_10 : f32 to vector<96x85xf32>
    %42 = arith.maximumf %16, %41 : vector<96x85xf32>
    %43 = arith.mulf %16, %21 : vector<96x85xf32>
    %44 = arith.subf %42, %43 : vector<96x85xf32>
    %45 = math.absf %16 : vector<96x85xf32>
    %cst_11 = arith.constant 0.000000e+00 : f32
    %46 = vector.broadcast %cst_11 : f32 to vector<96x85xf32>
    %47 = arith.subf %46, %45 : vector<96x85xf32>
    %48 = math.exp %47 : vector<96x85xf32>
    %49 = math.log1p %48 : vector<96x85xf32>
    %50 = arith.addf %44, %49 : vector<96x85xf32>
    %c4_i32 = arith.constant 4 : i32
    %51 = vector.broadcast %c4_i32 : i32 to vector<96x85xi32>
    %52 = arith.cmpi slt, %22, %51 : vector<96x85xi32>
    %53 = arith.select %52, %40, %50 : vector<96x85xi1>, vector<96x85xf32>
    %54 = vector.extract_strided_slice %21 {offsets = [0, 4], sizes = [96, 1], strides = [1, 1]} : vector<96x85xf32> to vector<96x1xf32>
    %55 = math.roundeven %54 : vector<96x1xf32>
    %56 = arith.subf %11, %55 : vector<96x1xf32>
    %57 = tpu.iota {dimensions = array<i32: 1>} : vector<96x2xi32>
    %c0_i32_12 = arith.constant 0 : i32
    %58 = vector.broadcast %c0_i32_12 : i32 to vector<96x2xi32>
    %59 = arith.cmpi eq, %57, %58 : vector<96x2xi32>
    %60 = vector.shape_cast %55 : vector<96x1xf32> to vector<96x1xf32>
    %61 = vector.broadcast %60 : vector<96x1xf32> to vector<96x2xf32>
    %62 = vector.shape_cast %56 : vector<96x1xf32> to vector<96x1xf32>
    %63 = vector.broadcast %62 : vector<96x1xf32> to vector<96x2xf32>
    %64 = arith.select %59, %61, %63 : vector<96x2xi1>, vector<96x2xf32>
    %cst_13 = arith.constant dense<0.000000e+00> : vector<2x85xf32>
    %65 = tpu.matmul %64, %53, %cst_13 {dimension_numbers = #tpu.dot_dimension_numbers<[0], [0], [1], [1], [0, 1, 1, 1], [], []>, precision = #tpu.contract_precision<fp32>} : vector<96x2xf32>, vector<96x85xf32>, vector<2x85xf32> -> vector<2x85xf32>
    %66 = vector.shape_cast %55 : vector<96x1xf32> to vector<1x96x1xf32>
    %cst_14 = arith.constant dense<0.000000e+00> : vector<1xf32>
    %67 = vector.multi_reduction <add>, %66, %cst_14 [1, 2] : vector<1x96x1xf32> to vector<1xf32>
    %68 = vector.shape_cast %67 : vector<1xf32> to vector<1x1x1xf32>
    %69 = vector.extract %68[0, 0, 0] : f32 from vector<1x1x1xf32>
    %70 = tpu.iota {dimensions = array<i32: 0>} : vector<2x85xi32>
    %71 = tpu.iota {dimensions = array<i32: 1>} : vector<2x85xi32>
    %c1_i32_15 = arith.constant 1 : i32
    %72 = vector.broadcast %c1_i32_15 : i32 to vector<2x85xi32>
    %73 = arith.cmpi eq, %70, %72 : vector<2x85xi32>
    %c0_i32_16 = arith.constant 0 : i32
    %74 = vector.broadcast %c0_i32_16 : i32 to vector<2x85xi32>
    %75 = arith.cmpi eq, %71, %74 : vector<2x85xi32>
    %76 = arith.andi %73, %75 : vector<2x85xi1>
    %77 = vector.broadcast %69 : f32 to vector<2x85xf32>
    %78 = arith.select %76, %77, %65 : vector<2x85xi1>, vector<2x85xf32>
    %c0_17 = arith.constant 0 : index
    %c0_18 = arith.constant 0 : index
    %c0_19 = arith.constant 0 : index
    %79 = vector.load %arg4[%c0_17, %c0_18, %c0_19] : memref<1x2x85xf32, #tpu.memory_space<vmem>>, vector<1x2x85xf32>
    %80 = vector.shape_cast %78 : vector<2x85xf32> to vector<1x2x85xf32>
    %81 = arith.addf %79, %80 : vector<1x2x85xf32>
    %c0_20 = arith.constant 0 : index
    %c0_21 = arith.constant 0 : index
    %c0_22 = arith.constant 0 : index
    %82 = vector.load %arg4[%c0_20, %c0_21, %c0_22] : memref<1x2x85xf32, #tpu.memory_space<vmem>>, vector<1x2x85xf32>
    tpu.vector_store %arg4[%c0_20, %c0_21, %c0_22], %81 {strides = array<i32>} : memref<1x2x85xf32, #tpu.memory_space<vmem>>, vector<1x2x85xf32>,
    return
  }
  func.func @transform_0(%arg0: i32, %arg1: i32) -> (i32, i32) {
    %c1_i32 = arith.constant 1 : i32
    %0 = arith.muli %arg0, %c1_i32 : i32
    %1 = arith.addi %0, %arg1 : i32
    %c0_i32 = arith.constant 0 : i32
    %2 = arith.minsi %1, %c0_i32 : i32
    %c0_i32_0 = arith.constant 0 : i32
    %c0_i32_1 = arith.constant 0 : i32
    return %2, %c0_i32_0 : i32, i32
  }
  func.func @transform_1(%arg0: i32, %arg1: i32) -> (i32, i32) {
    %c1_i32 = arith.constant 1 : i32
    %0 = arith.muli %arg0, %c1_i32 : i32
    %1 = arith.addi %0, %arg1 : i32
    %c0_i32 = arith.constant 0 : i32
    %2 = arith.minsi %1, %c0_i32 : i32
    %c0_i32_0 = arith.constant 0 : i32
    %c0_i32_1 = arith.constant 0 : i32
    return %2, %c0_i32_0 : i32, i32
  }
  func.func @transform_2(%arg0: i32, %arg1: i32) -> (i32, i32, i32) {
    %c0_i32 = arith.constant 0 : i32
    %c0_i32_0 = arith.constant 0 : i32
    %c0_i32_1 = arith.constant 0 : i32
    return %arg0, %c0_i32, %c0_i32_0 : i32, i32, i32
  }
}

</mosaic_0001>

<bundles_post_ra>
// kernel: tpu_custom_call.1
= control target key start
LH: loop header
LB: loop body
LE: loop exit
PB: predicated region body
PF: predicated region fallthrough
CT: control target
= control target key end

     0   :  { %v1367_v3 = vmov 1   ;;  %s2292_s0 = inlined_call_operand.vmem [shape: f32[96,85], index: 0, kind: input, shape index: {}]   ;;  %s2293_s1 = inlined_call_operand.vmem [shape: f32[96,85], index: 1, kind: input, shape index: {}]   ;;  %s2294_s2 = inlined_call_operand.hbm [shape: f32[1,2,85], index: 2, kind: output, shape index: {}]  }
   0x1   :  { %v1390_v0 = vld [vmem:[%s2293_s1 + $0x20] sm:$0xff]  ;;  %v1395_v1 = vld [vmem:[%s2293_s1 + $0x10] sm:$0xff]  ;;  %1263 = vset.pattern.permute.xlu2 %v1367_v3  ;;  %1262 = vset.pattern.permute.xlu1 %v1367_v3 }
   0x2   :  { %2305 = vst [vmem:[#allocation5_spill] sm:$0xff] %v1395_v1  ;;  %v1400_v2 = vld [vmem:[%s2293_s1] sm:$0xff]  ;;  %1261 = vset.pattern.permute.xlu0 %v1367_v3  ;;  %220 = vperm.xlu2 %1263, %v1390_v0  }
   0x3   :  { %210 = vperm.xlu1 %1262, %v1395_v1   ;;  %200 = vperm.xlu0 %1261, %v1400_v2  }
   0x4   :  { %7 = vsyncpa [#allocation3], 0  ;;  %v1408_v4 = vld [vmem:[%s2293_s1 + $0x28] sm:$0xff]  ;;  %v1413_v5 = vld [vmem:[%s2293_s1 + $0x18] sm:$0xff]  ;;  %v1176_v10 = vcvt.f32.s32 %v1395_v1  ;;  %v1160_v12 = vcvt.f32.s32 %v1400_v2  ;;  %v1174_v19 = vand.u32 2147483647, %v1395_v1  ;;  %v1192_v21 = vcvt.f32.s32 %v1390_v0 }
   0x5   :  { %v1418_v6 = vld [vmem:[%s2293_s1 + $0x8] sm:$0xff]  ;;  %v1426_v7 = vld [vmem:[%s2293_s1 + $0x40] sm:$0xff]  ;;  %v1431_v8 = vld [vmem:[%s2293_s1 + $0x38] sm:$0xff]  ;;  %v1179_v20 = vand.u32 2147483648, %v1395_v1  ;;  %v1184_v25 = vcvt.f32.s32 %v1413_v5  ;;  %v1163_v28 = vand.u32 2147483648, %v1400_v2  ;;  %v1200_v29 = vcvt.f32.s32 %v1408_v4  ;;  %s1369_s19 = smov 124  }
   0x6   :  { %v1436_v9 = vld [vmem:[%s2293_s1 + $0x30] sm:$0xff]  ;;  %v1168_v11 = vcvt.f32.s32 %v1418_v6  ;;  %v1177_v13 = vcvt.s32.f32 %v1176_v10  ;;  %v1161_v15 = vcvt.s32.f32 %v1160_v12  ;;  %v1447_v16 = vld [vmem:[%s2293_s1 + $0x58] sm:$0xff]  ;;  %v1457_v18 = vld [vmem:[%s2293_s1 + $0x48] sm:$0xff]  ;;  %v1171_v24 = vand.u32 2147483648, %v1418_v6  ;;  %s1371_s5 = smov [#allocation2]   ;;  %s1137_s9 = sshll.u32 %s2294_s2, 4  ;;  %s1138_s9 = int_to_ptr.hbm [resolvable:$true] %s1137_s9 }
   0x7   :  { %v1452_v17 = vld [vmem:[%s2293_s1 + $0x50] sm:$0xff]  ;;  %2307 = vst [vmem:[#allocation7_spill] sm:$0xff] %v1457_v18  ;;  %v1166_v26 = vand.u32 2147483647, %v1418_v6  ;;  %v1158_v30 = vand.u32 2147483647, %v1400_v2  ;;  %v1193_v31 = vcvt.s32.f32 %v1192_v21  ;;  %v1185_v34 = vcvt.s32.f32 %v1184_v25 }
   0x8   :  { %v1169_v14 = vcvt.s32.f32 %v1168_v11  ;;  %2306 = vst [vmem:[#allocation6_spill] sm:$0xff] %v1452_v17  ;;  %v1178_v22 = vand.u32 2147483647, %v1177_v13  ;;  %v1162_v27 = vand.u32 2147483647, %v1161_v15  ;;  %vm1175_vm0 = vcmp.lt.f32.partialorder %v1174_v19, 8388608.0 }
   0x9   :  { %vm1167_vm1 = vcmp.lt.f32.partialorder %v1166_v26, 8388608.0  ;;  %v1201_v36 = vcvt.s32.f32 %v1200_v29  ;;  %vm1159_vm2 = vcmp.lt.f32.partialorder %v1158_v30, 8388608.0  ;;  %v1190_v37 = vand.u32 2147483647, %v1390_v0  ;;  %s1135_s6 = sshll.u32 %s1371_s5, 4  ;;  %s1136_s6 = int_to_ptr.vmem [resolvable:$true] %s1135_s6 }
   0xa   :  { %225 = vperm.xlu2 %1263, %v1408_v4   ;;  %v1170_v23 = vand.u32 2147483647, %v1169_v14  ;;  %v1180_v32 = vor.u32 %v1179_v20, %v1178_v22  ;;  %v1164_v35 = vor.u32 %v1163_v28, %v1162_v27  ;;  %v1194_v38 = vand.u32 2147483647, %v1193_v31 }
   0xb   :  { %215 = vperm.xlu1 %1262, %v1413_v5   ;;  %205 = vperm.xlu0 %1261, %v1418_v6   ;;  %v1195_v39 = vand.u32 2147483648, %v1390_v0  ;;  %v1186_v42 = vand.u32 2147483647, %v1185_v34  ;;  %v1187_v43 = vand.u32 2147483648, %v1413_v5  ;;  %v1368_v44 = vmov 4   ;;  %v1528_v34 = vld [vmem:[%s2292_s0 + $0x20] sm:$0xff] }
   0xc   :  { %v1172_v33 = vor.u32 %v1171_v24, %v1170_v23  ;;  %v1474_v40 = vsel %vm1175_vm0, %v1180_v32, %v1395_v1  ;;  %v1481_v45 = vsel %vm1159_vm2, %v1164_v35, %v1400_v2  ;;  %v1182_v46 = vand.u32 2147483647, %v1413_v5 }
   0xd   :  { %v1202_v47 = vand.u32 2147483647, %v1201_v36  ;;  %v1203_v48 = vand.u32 2147483648, %v1408_v4  ;;  %v1198_v49 = vand.u32 2147483647, %v1408_v4  ;;  %v1196_v50 = vor.u32 %v1195_v39, %v1194_v38 }
   0xe   :  { %v1477_v41 = vsel %vm1167_vm1, %v1172_v33, %v1418_v6  ;;  %v1188_v51 = vor.u32 %v1187_v43, %v1186_v42  ;;  %vm1191_vm3 = vcmp.lt.f32.partialorder %v1190_v37, 8388608.0  ;;  %vm1183_vm4 = vcmp.lt.f32.partialorder %v1182_v46, 8388608.0  ;;  %v1543_v46 = vld [vmem:[%s2292_s0 + $0x10] sm:$0xff] }
   0xf   :  { %v1204_v52 = vor.u32 %v1203_v48, %v1202_v47  ;;  %vm1199_vm5 = vcmp.lt.f32.partialorder %v1198_v49, 8388608.0  ;;  %v1490_v53 = vsel %vm1191_vm3, %v1196_v50, %v1390_v0  ;;  %v1208_v56 = vcvt.f32.s32 %v1436_v9 }
  0x10   :  { %v1493_v54 = vsel %vm1183_vm4, %v1188_v51, %v1413_v5  ;;  %v585_v57 = vsub.f32 1.0, %v1477_v41  ;;  %v584_v58 = vsub.f32 1.0, %v1481_v45  ;;  %v586_v59 = vsub.f32 1.0, %v1474_v40 }
  0x11   :  { %v1496_v55 = vsel %vm1199_vm5, %v1204_v52, %v1408_v4  ;;  %v1209_v60 = vcvt.s32.f32 %v1208_v56  ;;  %v1216_v61 = vcvt.f32.s32 %v1431_v8  ;;  %v1211_v63 = vand.u32 2147483648, %v1436_v9  ;;  %v1550_v56 = vld [vmem:[%s2292_s0 + $0x28] sm:$0xff] }
  0x12   :  { %240 = vperm.xlu2 %1263, %v1426_v7   ;;  %v1206_v3 = vand.u32 2147483647, %v1436_v9  ;;  %v1224_v11 = vcvt.f32.s32 %v1426_v7  ;;  %v588_v12 = vsub.f32 1.0, %v1490_v53  ;;  %v587_v13 = vsub.f32 1.0, %v1493_v54 }
  0x13   :  { %235 = vperm.xlu1 %1262, %v1431_v8   ;;  %230 = vperm.xlu0 %1261, %v1436_v9   ;;  %v1210_v62 = vand.u32 2147483647, %v1209_v60  ;;  %v1217_v10 = vcvt.s32.f32 %v1216_v61  ;;  %v589_v14 = vsub.f32 1.0, %v1496_v55  ;;  %v1219_v20 = vand.u32 2147483648, %v1431_v8  ;;  %v1559_v60 = vld [vmem:[%s2292_s0 + $0x40] sm:$0xff] }
  0x14   :  { %vm1207_vm6 = vcmp.lt.f32.partialorder %v1206_v3, 8388608.0  ;;  %v1225_v21 = vcvt.s32.f32 %v1224_v11  ;;  %v1214_v22 = vand.u32 2147483647, %v1431_v8  ;;  %v1232_v24 = vcvt.f32.s32 %v1457_v18 }
  0x15   :  { %v1212_v15 = vor.u32 %v1211_v63, %v1210_v62  ;;  %v1218_v19 = vand.u32 2147483647, %v1217_v10  ;;  %v1227_v27 = vand.u32 2147483648, %v1426_v7  ;;  %v1222_v28 = vand.u32 2147483647, %v1426_v7 }
  0x16   :  { %v1226_v26 = vand.u32 2147483647, %v1225_v21  ;;  %vm1215_vm7 = vcmp.lt.f32.partialorder %v1214_v22, 8388608.0  ;;  %v1233_v30 = vcvt.s32.f32 %v1232_v24  ;;  %v1240_v33 = vcvt.f32.s32 %v1452_v17 }
  0x17   :  { %v1515_v23 = vsel %vm1207_vm6, %v1212_v15, %v1436_v9  ;;  %v1220_v25 = vor.u32 %v1219_v20, %v1218_v19  ;;  %vm1223_vm8 = vcmp.lt.f32.partialorder %v1222_v28, 8388608.0  ;;  %v1235_v36 = vand.u32 2147483648, %v1457_v18  ;;  %v1572_v19 = vld [vmem:[%s2292_s0 + $0x58] sm:$0xff] }
  0x18   :  { %v590_v29 = vsub.f32 1.0, %v1515_v23  ;;  %v1228_v32 = vor.u32 %v1227_v27, %v1226_v26  ;;  %v1234_v35 = vand.u32 2147483647, %v1233_v30  ;;  %v395_v37 = vand.u32 2147483647, %v1528_v34 }
  0x19   :  { %v1522_v31 = vsel %vm1215_vm7, %v1220_v25, %v1431_v8  ;;  %v1230_v39 = vand.u32 2147483647, %v1457_v18  ;;  %v1241_v42 = vcvt.s32.f32 %v1240_v33  ;;  %v1248_v43 = vcvt.f32.s32 %v1447_v16 }
  0x1a   :  { %255 = vperm.xlu2 %1263, %v1447_v16   ;;  %v1535_v38 = vsel %vm1223_vm8, %v1228_v32, %v1426_v7  ;;  %v1236_v48 = vor.u32 %v1235_v36, %v1234_v35  ;;  %v407_v49 = vsub.f32 0.0, %v395_v37  ;;  %v1243_v51 = vand.u32 2147483648, %v1452_v17 }
  0x1b   :  { %250 = vperm.xlu1 %1262, %v1452_v17   ;;  %245 = vperm.xlu0 %1261, %v1457_v18   ;;  %v592_v47 = vsub.f32 1.0, %v1535_v38  ;;  %vm1231_vm9 = vcmp.lt.f32.partialorder %v1230_v39, 8388608.0  ;;  %v1242_v50 = vand.u32 2147483647, %v1241_v42  ;;  %v1249_v52 = vcvt.s32.f32 %v1248_v43 }
  0x1c   :  { %v1562_v61 = vsel %vm1231_vm9, %v1236_v48, %v1457_v18  ;;  %v423_v62 = vmul.f32 1.442695, %v407_v49  ;;  %v396_v63 = vand.u32 2147483647, %v1550_v56  ;;  %v1251_v11 = vand.u32 2147483648, %v1447_v16 }
  0x1d   :  { %v1244_v3 = vor.u32 %v1243_v51, %v1242_v50  ;;  %v1250_v10 = vand.u32 2147483647, %v1249_v52  ;;  %v593_v15 = vsub.f32 1.0, %v1562_v61  ;;  %v275_v24 = vmul.f32 0.5, %v1550_v56  ;;  %v1596_v51 = vld [vmem:[%s2292_s0 + $0x18] sm:$0xff] }
  0x1e   :  { %v408_v20 = vsub.f32 0.0, %v396_v63  ;;  %v402_v27 = vand.u32 2147483647, %v1572_v19  ;;  %v2295_v37 = vlaneseq  ;;  %v272_v50 = vmul.f32 0.5, %v1543_v46 }
  0x1f   :  { %v1252_v22 = vor.u32 %v1251_v11, %v1250_v10  ;;  %v1609_v10 = vld [vmem:[%s2292_s0] sm:$0xff]  ;;  %v281_v11 = vmul.f32 0.5, %v1572_v19 }
  0x20   :  { %v425_v28 = vmul.f32 1.442695, %v408_v20  ;;  %v414_v35 = vsub.f32 0.0, %v402_v27  ;;  %v1590_v49 = vand.u32 127, %v2295_v37  ;;  %v391_v27 = vand.u32 2147483647, %v1609_v10 }
  0x22   :  { %1266 = vset.pattern.permute.xlu2 %v1368_v44  ;;  %vm318_vm12 = vcmp.lt.s32.totalorder %v1590_v49, 2  ;;  %vm197_vm14 = vcmp.eq.s32.totalorder %v1590_v49, 0  ;;  %vm559_vm2 = vcmp.lt.s32.totalorder %v1590_v49, 4 }
  0x23   :  { %1265 = vset.pattern.permute.xlu1 %v1368_v44  ;;  %1264 = vset.pattern.permute.xlu0 %v1368_v44  ;;  %v591_v44 = vsub.f32 1.0, %v1522_v31 }
  0x24   :  { %608 = vperm.xlu2 %1266, %v1474_v40   ;;  %603 = vperm.xlu1 %1265, %v1477_v41  }
  0x25   :  { %598 = vperm.xlu0 %1264, %v1481_v45  }
  0x2c   :  { %618 = vperm.xlu2 %1266, %v1490_v53   ;;  %613 = vperm.xlu1 %1265, %v1493_v54  }
  0x2d   :  { %623 = vperm.xlu0 %1264, %v1496_v55  }
  0x34   :  { %663 = vperm.xlu2 %1266, %v585_v57   ;;  %658 = vperm.xlu1 %1265, %v584_v58   ;;  %v1238_v57 = vand.u32 2147483647, %v1452_v17  ;;  %v393_v58 = vand.u32 2147483647, %v1543_v46 }
  0x35   :  { %668 = vperm.xlu0 %1264, %v586_v59   ;;  %v274_v59 = vmul.f32 0.5, %v1528_v34 }
  0x36   :  { %vm1239_vm10 = vcmp.lt.f32.partialorder %v1238_v57, 8388608.0  ;;  %v359_v57 = vmax.f32 %v1528_v34, 0.0 }
  0x37   :  { %1267 = vtanh.f32 %v274_v59  ;;  %v1575_v21 = vsel %vm1239_vm10, %v1244_v3, %v1452_v17  ;;  %v372_v3 = vmul.f32 %v1408_v4, %v1550_v56 }
  0x38   :  { %1269 = vpow2.f32 %v423_v62  ;;  %v594_v36 = vsub.f32 1.0, %v1575_v21  ;;  %v360_v62 = vmax.f32 %v1550_v56, 0.0 }
  0x39   :  { %1271 = vtanh.f32 %v275_v24 }
  0x3c   :  { %678 = vperm.xlu2 %1266, %v588_v12   ;;  %673 = vperm.xlu1 %1265, %v587_v13   ;;  %v1246_v12 = vand.u32 2147483647, %v1447_v16  ;;  %v399_v13 = vand.u32 2147483647, %v1559_v60 }
  0x3d   :  { %683 = vperm.xlu0 %1264, %v589_v14   ;;  %v405_v14 = vsub.f32 0.0, %v393_v58  ;;  %v371_v58 = vmul.f32 %v1390_v0, %v1528_v34 }
  0x3e   :  { %vm1247_vm11 = vcmp.lt.f32.partialorder %v1246_v12, 8388608.0  ;;  %v411_v25 = vsub.f32 0.0, %v399_v13 }
  0x3f   :  { %v419_v26 = vmul.f32 1.442695, %v405_v14  ;;  %v1582_v30 = vsel %vm1247_vm11, %v1252_v22, %v1447_v16  ;;  %v278_v14 = vmul.f32 0.5, %v1559_v60  ;;  %vm1089_vm11 = vcmask 7168  }
  0x40   :  { %2308 = vst [vmem:[#allocation8_spill] sm:$0xff] %v1582_v30  ;;  %v431_v33 = vmul.f32 1.442695, %v411_v25  ;;  %v595_v39 = vsub.f32 1.0, %v1582_v30  ;;  %v1616_v25 = vsub.f32 %v359_v57, %v371_v58  ;;  %v363_v58 = vmax.f32 %v1559_v60, 0.0 }
  0x41   :  { %1273 = vpow2.f32 %v419_v26 }
  0x42   :  { %1275 = vpow2.f32 %v425_v28  ;;  %v1619_v28 = vsub.f32 %v360_v62, %v372_v3  ;;  %v403_v62 = vsub.f32 0.0, %v391_v27 }
  0x43   :  { %1277 = vpow2.f32 %v431_v33 }
  0x44   :  { %688 = vperm.xlu2 %1266, %v590_v29   ;;  %628 = vperm.xlu1 %1265, %v1515_v23   ;;  %v1268_v29 = vpop.eup %1267 }
  0x45   :  { %633 = vperm.xlu0 %1264, %v1522_v31   ;;  %v1270_v32 = vpop.eup %1269  ;;  %v298_v42 = vmul.f32 0.5, %v1268_v29 }
  0x46   :  { %v475_v43 = vadd.f32 1.0, %v1270_v32  ;;  %v478_v59 = vmul.f32 -0.5, %v1270_v32  ;;  %v481_v13 = vand.u32 2147483647, %v1270_v32 }
  0x47   :  { %v310_v63 = vadd.f32 0.5, %v298_v42 }
  0x48   :  { %1279 = vlog2.f32 %v475_v43  ;;  %v479_v26 = vadd.f32 1.0, %v478_v59  ;;  %vm1626_vm13 = vcmp.lt.f32.partialorder %v481_v13, 0.0004427343  ;;  %v375_v59 = vmul.f32 %v1426_v7, %v1559_v60 }
  0x4c   :  { %638 = vperm.xlu2 %1266, %v1535_v38   ;;  %693 = vperm.xlu1 %1265, %v591_v44   ;;  %v437_v44 = vmul.f32 1.442695, %v414_v35  ;;  %v1624_v35 = vsel %vm318_vm12, %v310_v63, %v1528_v34  ;;  %v480_v34 = vmul.f32 %v1270_v32, %v479_v26 }
  0x4d   :  { %698 = vperm.xlu0 %1264, %v592_v47   ;;  %v1272_v47 = vpop.eup %1271 }
  0x4e   :  { %v1598_v52 = vpop.eup %1273  ;;  %1281 = vpow2.f32 %v437_v44  ;;  %v299_v20 = vmul.f32 0.5, %v1272_v47 }
  0x4f   :  { %v1276_v12 = vpop.eup %1275  ;;  %1283 = vtanh.f32 %v272_v50  ;;  %v457_v22 = vadd.f32 1.0, %v1598_v52 }
  0x50   :  { %v1278_v24 = vpop.eup %1277  ;;  %v484_v29 = vadd.f32 1.0, %v1276_v12  ;;  %v487_v33 = vmul.f32 -0.5, %v1276_v12  ;;  %1285 = vtanh.f32 %v281_v11  ;;  %v311_v44 = vadd.f32 0.5, %v299_v20 }
  0x51   :  { %1287 = vtanh.f32 %v278_v14  ;;  %v1280_v42 = vpop.eup %1279  ;;  %v511_v47 = vadd.f32 1.0, %v1278_v24  ;;  %v514_v50 = vmul.f32 -0.5, %v1278_v24  ;;  %v490_v11 = vand.u32 2147483647, %v1276_v12 }
  0x52   :  { %1289 = vlog2.f32 %v457_v22  ;;  %v488_v3 = vadd.f32 1.0, %v487_v33  ;;  %v517_v13 = vand.u32 2147483647, %v1278_v24  ;;  %v477_v14 = vmul.f32 0.6931472, %v1280_v42 }
  0x53   :  { %1291 = vlog2.f32 %v484_v29  ;;  %v1644_v22 = vsel %vm318_vm12, %v311_v44, %v1550_v56  ;;  %v357_v29 = vmax.f32 %v1543_v46, 0.0  ;;  %v369_v33 = vmul.f32 %v1395_v1, %v1543_v46 }
  0x54   :  { %703 = vperm.xlu2 %1266, %v593_v15   ;;  %643 = vperm.xlu1 %1265, %v1562_v61   ;;  %v394_v15 = vand.u32 2147483647, %v1596_v51  ;;  %v1282_v57 = vpop.eup %1281  ;;  %1293 = vlog2.f32 %v511_v47  ;;  %v1649_v18 = vmul.f32 %v1276_v12, %v488_v3  ;;  %vm1651_vm15 = vcmp.lt.f32.partialorder %v490_v11, 0.0004427343 }
  0x55   :  { %648 = vperm.xlu0 %1264, %v1575_v21   ;;  %v1284_v63 = vpop.eup %1283  ;;  %v538_v32 = vadd.f32 1.0, %v1282_v57  ;;  %v1655_v56 = vsub.f32 %v363_v58, %v375_v59  ;;  %vm1657_vm0 = vcmp.lt.f32.partialorder %v517_v13, 0.0004427343  ;;  %v415_v11 = vmul.f32 1.442695, %v403_v62 }
  0x56   :  { %v1286_v20 = vpop.eup %1285  ;;  %v296_v37 = vmul.f32 0.5, %v1284_v63  ;;  %v381_v59 = vsub.f32 %v357_v29, %v369_v33  ;;  %v378_v62 = vmul.f32 %v1447_v16, %v1572_v19 }
  0x57   :  { %v1288_v27 = vpop.eup %1287  ;;  %1295 = vlog2.f32 %v538_v32 }
  0x58   :  { %v1290_v42 = vpop.eup %1289  ;;  %v302_v12 = vmul.f32 0.5, %v1288_v27  ;;  %v308_v58 = vadd.f32 0.5, %v296_v37  ;;  %1297 = vpow2.f32 %v415_v11 }
  0x59   :  { %v1292_v32 = vpop.eup %1291  ;;  %v459_v13 = vmul.f32 0.6931472, %v1290_v42 }
  0x5c   :  { %653 = vperm.xlu2 %1266, %v1582_v30   ;;  %708 = vperm.xlu1 %1265, %v594_v36   ;;  %v1587_v48 = vpop.permute.xlu2 %220  ;;  %v544_v30 = vand.u32 2147483647, %v1282_v57  ;;  %v463_v36 = vand.u32 2147483647, %v1598_v52 }
  0x5d   :  { %713 = vperm.xlu0 %1264, %v595_v39   ;;  %v406_v39 = vsub.f32 0.0, %v394_v15  ;;  %v541_v15 = vmul.f32 -0.5, %v1282_v57 }
  0x5e   :  { %vm1687_vm1 = vcmp.lt.f32.partialorder %v544_v30, 0.0004427343  ;;  %vm1692_vm3 = vcmp.lt.f32.partialorder %v463_v36, 0.0004427343  ;;  %v1701_v30 = vld [vmem:[%s2292_s0 + $0x30] sm:$0xff] }
  0x5f   :  { %v421_v26 = vmul.f32 1.442695, %v406_v39  ;;  %v483_v39 = vsel %vm1626_vm13, %v480_v34, %v477_v14  ;;  %v542_v63 = vadd.f32 1.0, %v541_v15  ;;  %v1294_v34 = vpop.eup %1293  ;;  %vm80_vm13 = vcmask 689152  }
  0x60   :  { %v551_v14 = vadd.f32 %v483_v39, %v1616_v25  ;;  %v1296_v15 = vpop.eup %1295  ;;  %v1685_v25 = vld [vmem:[%s2292_s0 + $0x38] sm:$0xff]  ;;  %v513_v33 = vmul.f32 0.6931472, %v1294_v34  ;;  %v1706_v39 = vsel %vm318_vm12, %v308_v58, %v1543_v46  ;;  %v367_v46 = vmul.f32 %v1400_v2, %v1609_v10  ;;  %v1737_v2 = vld [vmem:[%s2292_s0 + $0x8] sm:$0xff] }
  0x61   :  { %v540_v27 = vmul.f32 0.6931472, %v1296_v15  ;;  %1299 = vpow2.f32 %v421_v26  ;;  %v398_v26 = vand.u32 2147483647, %v1685_v25  ;;  %v1742_v44 = vpop.eup %1297  ;;  %v271_v36 = vmul.f32 0.5, %v1737_v2 }
  0x64   :  { %v1630_v43 = vpop.permute.xlu2 %225  ;;  %1053 = vrot.lane.b32.xlu2 %v1481_v45, %s1369_s19  ;;  %v460_v45 = vmul.f32 -0.5, %v1598_v52 }
  0x65   :  { %1055 = vrot.lane.b32.xlu0 %v1477_v41, %s1369_s19  ;;  %v515_v41 = vadd.f32 1.0, %v514_v50  ;;  %v305_v50 = vmul.f32 0.5, %v1286_v20 }
  0x66   :  { %v461_v47 = vadd.f32 1.0, %v460_v45  ;;  %v270_v45 = vmul.f32 0.5, %v1609_v10 }
  0x67   :  { %v1665_v3 = vmul.f32 %v1278_v24, %v515_v41  ;;  %v366_v24 = vmax.f32 %v1572_v19, 0.0  ;;  %v317_v20 = vadd.f32 0.5, %v305_v50  ;;  %v486_v41 = vmul.f32 0.6931472, %v1292_v32  ;;  %v1745_v34 = vpop.eup %1299 }
  0x68   :  { %v462_v37 = vmul.f32 %v1598_v52, %v461_v47  ;;  %1301 = vtanh.f32 %v270_v45  ;;  %v355_v32 = vmax.f32 %v1609_v10, 0.0  ;;  %v358_v45 = vmax.f32 %v1596_v51, 0.0 }
  0x69   :  { %v390_v42 = vsub.f32 %v366_v24, %v378_v62  ;;  %v330_v47 = vsel %vm318_vm12, %v317_v20, %v1572_v19  ;;  %v492_v50 = vsel %vm1651_vm15, %v1649_v18, %v486_v41  ;;  %v519_v19 = vsel %vm1657_vm0, %v1665_v3, %v513_v33 }
  0x6a   :  { %v370_v24 = vmul.f32 %v1413_v5, %v1596_v51  ;;  %v410_v62 = vsub.f32 0.0, %v398_v26  ;;  %v1754_v15 = vadd.f32 %v492_v50, %v1619_v28  ;;  %v392_v20 = vand.u32 2147483647, %v1737_v2 }
  0x6b   :  { %v1762_v41 = vsub.f32 %v355_v32, %v367_v46 }
  0x6c   :  { %v1663_v1 = vpop.permute.xlu2 %240  ;;  %1057 = vrot.lane.b32.xlu2 %v1474_v40, %s1369_s19  ;;  %v262_v40 = vsel %vm197_vm14, %v1587_v48, %v1390_v0  ;;  %v273_v48 = vmul.f32 0.5, %v1596_v51 }
  0x6d   :  { %1059 = vrot.lane.b32.xlu0 %v1493_v54, %s1369_s19  ;;  %v543_v54 = vmul.f32 %v1282_v57, %v542_v63  ;;  %v335_v52 = vsub.f32 %v1624_v35, %v262_v40  ;;  %v314_v57 = vadd.f32 0.5, %v302_v12  ;;  %v465_v63 = vsel %vm1692_vm3, %v462_v37, %v459_v13 }
  0x6e   :  { %1303 = vtanh.f32 %v273_v48  ;;  %v1756_v40 = vadd.f32 %v465_v63, %v381_v59  ;;  %v466_v59 = vadd.f32 1.0, %v1745_v34  ;;  %v1777_v48 = vsub.f32 %v358_v45, %v370_v24 }
  0x6f   :  { %v546_v35 = vsel %vm1687_vm1, %v543_v54, %v540_v27  ;;  %v347_v3 = vmul.f32 %v335_v52, %v335_v52  ;;  %v1760_v54 = vadd.f32 %v519_v19, %v1655_v56  ;;  %1305 = vtanh.f32 %v271_v36  ;;  %v1775_v56 = vld [vmem:[%s2292_s0 + $0x50] sm:$0xff] }
  0x70   :  { %v558_v13 = vadd.f32 %v546_v35, %v390_v42  ;;  %v429_v52 = vmul.f32 1.442695, %v410_v62  ;;  %v356_v42 = vmax.f32 %v1737_v2, 0.0  ;;  %v280_v35 = vmul.f32 0.5, %v1775_v56 }
  0x71   :  { %v1767_v29 = vsel %vm559_vm2, %v347_v3, %v551_v14  ;;  %v442_v14 = vmul.f32 -0.5, %v1742_v44  ;;  %v401_v46 = vand.u32 2147483647, %v1775_v56  ;;  %v368_v3 = vmul.f32 %v1418_v6, %v1737_v2 }
  0x73   :  { %v413_v6 = vsub.f32 0.0, %v401_v46  ;;  %v443_v24 = vadd.f32 1.0, %v442_v14 }
  0x74   :  { %v256_v12 = vpop.permute.xlu2 %255  ;;  %1061 = vrot.lane.b32.xlu2 %v1490_v53, %s1369_s19  ;;  %v397_v53 = vand.u32 2147483647, %v1701_v30 }
  0x75   :  { %v1727_v11 = vpop.permute.xlu1 %210  ;;  %v1729_v17 = vpop.permute.xlu0 %200  ;;  %v269_v18 = vsel %vm197_vm14, %v256_v12, %v1447_v16  ;;  %1063 = vrot.lane.b32.xlu0 %v1496_v55, %s1369_s19  ;;  %v327_v16 = vsel %vm318_vm12, %v314_v57, %v1559_v60  ;;  %v439_v60 = vadd.f32 1.0, %v1742_v44 }
  0x76   :  { %v342_v58 = vsub.f32 %v330_v47, %v269_v18  ;;  %v1302_v55 = vpop.eup %1301  ;;  %v409_v27 = vsub.f32 0.0, %v397_v53  ;;  %v404_v47 = vsub.f32 0.0, %v392_v20  ;;  %v277_v18 = vmul.f32 0.5, %v1685_v25 }
  0x77   :  { %v1304_v33 = vpop.eup %1303  ;;  %v294_v0 = vmul.f32 0.5, %v1302_v55  ;;  %1307 = vlog2.f32 %v439_v60 }
  0x78   :  { %v354_v37 = vmul.f32 %v342_v58, %v342_v58  ;;  %v427_v63 = vmul.f32 1.442695, %v409_v27  ;;  %v297_v12 = vmul.f32 0.5, %v1304_v33  ;;  %1309 = vlog2.f32 %v466_v59 }
  0x79   :  { %v306_v53 = vadd.f32 0.5, %v294_v0  ;;  %1311 = vpow2.f32 %v429_v52  ;;  %v276_v58 = vmul.f32 0.5, %v1701_v30  ;;  %v417_v45 = vmul.f32 1.442695, %v404_v47 }
  0x7a   :  { %v571_v28 = vsel %vm559_vm2, %v354_v37, %v558_v13  ;;  %v1306_v13 = vpop.eup %1305  ;;  %1313 = vtanh.f32 %v280_v35  ;;  %v309_v62 = vadd.f32 0.5, %v297_v12  ;;  %v472_v0 = vand.u32 2147483647, %v1745_v34 }
  0x7b   :  { %v1779_v57 = vand.u32 4294901760, %v571_v28  ;;  %1315 = vpow2.f32 %v427_v63  ;;  %v362_v63 = vmax.f32 %v1685_v25, 0.0 }
  0x7c   :  { %1065 = vrot.lane.b32.xlu2 %v1515_v23, %s1369_s19  ;;  %v263_v23 = vsel %vm197_vm14, %v1630_v43, %v1408_v4  ;;  %v266_v4 = vsel %vm197_vm14, %v1663_v1, %v1426_v7  ;;  %v469_v43 = vmul.f32 -0.5, %v1745_v34  ;;  %1317 = vtanh.f32 %v277_v18  ;;  %v2327_v1 = vld [vmem:[#allocation6_spill] sm:$0xff] }
  0x7d   :  { %2319 = vst [vmem:[#allocation9_spill] sm:$0xff] %v1779_v57  ;;  %v1786_v26 = vpop.permute.xlu1 %215  ;;  %v1788_v50 = vpop.permute.xlu0 %205  ;;  %769 = vmatpush.msra.mxu0 %v1779_v57  ;;  %v1792_v32 = vsub.f32 %v571_v28, %v1779_v57  ;;  %933 = vmatpush.msra.mxu3 %v1779_v57  ;;  %v339_v20 = vsub.f32 %v327_v16, %v266_v4  ;;  %v295_v7 = vmul.f32 0.5, %v1306_v13  ;;  %1319 = vtanh.f32 %v276_v58 }
  0x7e   :  { %v1800_v19 = vpop.permute.xlu2 %608  ;;  %1067 = vrot.lane.b32.xlu0 %v1522_v31, %s1369_s19  ;;  %v336_v31 = vsub.f32 %v1644_v22, %v263_v23  ;;  %v1308_v37 = vpop.eup %1307  ;;  %v1823_v22 = vsel %vm318_vm12, %v306_v53, %v1609_v10  ;;  %v470_v27 = vadd.f32 1.0, %v469_v43  ;;  %v1825_v28 = vsub.f32 %v356_v42, %v368_v3  ;;  %v1841_v42 = vld [vmem:[%s2292_s0 + $0x48] sm:$0xff] }
  0x7f   :  { %2320 = vst [vmem:[#allocation10_spill] sm:$0xff] %v1792_v32  ;;  %888 = vmatpush.msra.mxu2 %v1792_v32  ;;  %v2302_v36 = vand.u32 4294901760, %v1792_v32  ;;  %v1310_v60 = vpop.eup %1309  ;;  %1321 = vpow2.f32 %v417_v45  ;;  %v435_v10 = vmul.f32 1.442695, %v413_v6  ;;  %v1849_v35 = vsel %vm318_vm12, %v309_v62, %v1596_v51 }
  0x80   :  { %2321 = vst [vmem:[#allocation11_spill] sm:$0xff] %v1800_v19  ;;  %v1829_v33 = vpop.eup %1311  ;;  %v1831_v16 = vmul.f32 %v336_v31, %v336_v31  ;;  %v279_v23 = vmul.f32 0.5, %v1841_v42  ;;  %v351_v18 = vmul.f32 %v339_v20, %v339_v20  ;;  %v307_v53 = vadd.f32 0.5, %v295_v7 }
  0x81   :  { %v808_v55 = vsub.f32 %v1792_v32, %v2302_v36  ;;  %v1314_v47 = vpop.eup %1313  ;;  %v374_v3 = vmul.f32 %v1431_v8, %v1685_v25  ;;  %1323 = vpow2.f32 %v435_v10  ;;  %v1861_v58 = vmul.f32 0.6931472, %v1310_v60 }
  0x82   :  { %v1857_v12 = vpop.eup %1315  ;;  %v1864_v13 = vmul.f32 %v1745_v34, %v470_v27  ;;  %v502_v4 = vadd.f32 1.0, %v1829_v33  ;;  %v400_v43 = vand.u32 2147483647, %v1841_v42  ;;  %vm1868_vm4 = vcmp.lt.f32.partialorder %v472_v0, 0.0004427343 }
  0x83   :  { %v809_v59 = vand.u32 4294901760, %v808_v55  ;;  %v1318_v51 = vpop.eup %1317  ;;  %v361_v45 = vmax.f32 %v1701_v30, 0.0  ;;  %v373_v6 = vmul.f32 %v1436_v9, %v1701_v30  ;;  %v1875_v62 = vmul.f32 0.6931472, %v1308_v37 }
  0x84   :  { %1069 = vrot.lane.b32.xlu2 %v1535_v38, %s1369_s19  ;;  %v1844_v38 = vmul.f32 %v1742_v44, %v443_v24  ;;  %v1320_v31 = vpop.eup %1319  ;;  %v304_v24 = vmul.f32 0.5, %v1314_v47  ;;  %v493_v34 = vadd.f32 1.0, %v1857_v12  ;;  %1325 = vtanh.f32 %v279_v23 }
  0x85   :  { %v1834_v52 = vpop.permute.xlu1 %235  ;;  %v1836_v14 = vpop.permute.xlu0 %230  ;;  %810 = vmatpush.msra.mxu1 %v809_v59  ;;  %v412_v55 = vsub.f32 0.0, %v400_v43  ;;  %v1883_v7 = vsel %vm559_vm2, %v351_v18, %v1760_v54  ;;  %v1888_v60 = vsel %vm318_vm12, %v307_v53, %v1737_v2  ;;  %v301_v27 = vmul.f32 0.5, %v1318_v51 }
  0x86   :  { %v1852_v46 = vpop.permute.xlu2 %618  ;;  %1071 = vrot.lane.b32.xlu0 %v1562_v61, %s1369_s19  ;;  %v1878_v20 = vpop.eup %1321  ;;  %v1890_v59 = vsub.f32 %v362_v63, %v374_v3  ;;  %1327 = vlog2.f32 %v502_v4  ;;  %v505_v0 = vmul.f32 -0.5, %v1829_v33  ;;  %v300_v10 = vmul.f32 0.5, %v1320_v31  ;;  %v2326_v31 = vld [vmem:[#allocation8_spill] sm:$0xff] }
  0x87   :  { %2322 = vst [vmem:[#allocation12_spill] sm:$0xff] %v1852_v46  ;;  %v1324_v54 = vpop.eup %1323  ;;  %v1899_v47 = vsub.f32 %v361_v45, %v373_v6  ;;  %v316_v23 = vadd.f32 0.5, %v304_v24  ;;  %v365_v63 = vmax.f32 %v1775_v56, 0.0  ;;  %v433_v53 = vmul.f32 1.442695, %v412_v55  ;;  %v2328_v45 = vld [vmem:[#allocation5_spill] sm:$0xff] }
  0x88   :  { %v448_v3 = vadd.f32 1.0, %v1878_v20  ;;  %1329 = vlog2.f32 %v493_v34  ;;  %v529_v51 = vadd.f32 1.0, %v1324_v54  ;;  %v532_v4 = vmul.f32 -0.5, %v1324_v54 }
  0x89   :  { %v313_v6 = vadd.f32 0.5, %v301_v27  ;;  %v496_v24 = vmul.f32 -0.5, %v1857_v12  ;;  %v506_v37 = vadd.f32 1.0, %v505_v0  ;;  %v312_v55 = vadd.f32 0.5, %v300_v10 }
  0x8a   :  { %v1326_v36 = vpop.eup %1325  ;;  %v377_v34 = vmul.f32 %v2327_v1, %v1775_v56  ;;  %1331 = vlog2.f32 %v529_v51  ;;  %v533_v57 = vadd.f32 1.0, %v532_v4  ;;  %v260_v0 = vsel %vm197_vm14, %v1727_v11, %v2328_v45 }
  0x8b   :  { %1333 = vpow2.f32 %v433_v53  ;;  %v508_v10 = vand.u32 2147483647, %v1829_v33  ;;  %v499_v51 = vand.u32 2147483647, %v1857_v12  ;;  %v535_v32 = vand.u32 2147483647, %v1324_v54 }
  0x8c   :  { %1073 = vrot.lane.b32.xlu2 %v1575_v21, %s1369_s19  ;;  %v451_v21 = vmul.f32 -0.5, %v1878_v20  ;;  %v1328_v27 = vpop.eup %1327  ;;  %1335 = vlog2.f32 %v448_v3  ;;  %v389_v11 = vsub.f32 %v365_v63, %v377_v34  ;;  %v265_v4 = vsel %vm197_vm14, %v1834_v52, %v1431_v8 }
  0x8d   :  { %v251_v2 = vpop.permute.xlu1 %250  ;;  %v1902_v18 = vpop.permute.xlu0 %245  ;;  %v504_v3 = vmul.f32 0.6931472, %v1328_v27  ;;  %vm1937_vm5 = vcmp.lt.f32.partialorder %v508_v10, 0.0004427343  ;;  %vm1945_vm6 = vcmp.lt.f32.partialorder %v499_v51, 0.0004427343 }
  0x8e   :  { %v1905_v43 = vpop.permute.xlu2 %663  ;;  %1075 = vrot.lane.b32.xlu0 %v2326_v31, %s1369_s19  ;;  %v268_v46 = vsel %vm197_vm14, %v251_v2, %v2327_v1  ;;  %v329_v31 = vsel %vm318_vm12, %v316_v23, %v1775_v56  ;;  %v452_v19 = vadd.f32 1.0, %v451_v21  ;;  %v497_v1 = vadd.f32 1.0, %v496_v24  ;;  %v2338_v51 = vld [vmem:[#allocation7_spill] sm:$0xff] }
  0x8f   :  { %2325 = vst [vmem:[#allocation13_spill] sm:$0xff] %v1905_v43  ;;  %v303_v2 = vmul.f32 0.5, %v1326_v36  ;;  %v1330_v43 = vpop.eup %1329  ;;  %v326_v56 = vsel %vm318_vm12, %v313_v6, %v1685_v25  ;;  %v325_v23 = vsel %vm318_vm12, %v312_v55, %v1701_v30  ;;  %v341_v53 = vsub.f32 %v329_v31, %v268_v46 }
  0x90   :  { %v507_v21 = vmul.f32 %v1829_v33, %v506_v37  ;;  %v534_v36 = vmul.f32 %v1324_v54, %v533_v57  ;;  %v1332_v45 = vpop.eup %1331  ;;  %v264_v25 = vsel %vm197_vm14, %v1836_v14, %v1436_v9  ;;  %vm1949_vm7 = vcmp.lt.f32.partialorder %v535_v32, 0.0004427343 }
  0x91   :  { %v1334_v52 = vpop.eup %1333  ;;  %v495_v46 = vmul.f32 0.6931472, %v1330_v43  ;;  %v498_v37 = vmul.f32 %v1857_v12, %v497_v1  ;;  %v531_v54 = vmul.f32 0.6931472, %v1332_v45  ;;  %v315_v63 = vadd.f32 0.5, %v303_v2 }
  0x92   :  { %v338_v9 = vsub.f32 %v326_v56, %v265_v4  ;;  %v353_v14 = vmul.f32 %v341_v53, %v341_v53  ;;  %v520_v55 = vadd.f32 1.0, %v1334_v52  ;;  %v523_v34 = vmul.f32 -0.5, %v1334_v52  ;;  %v1336_v32 = vpop.eup %1335 }
  0x93   :  { %v2335_v31 = vand.u32 2147483647, %v1742_v44  ;;  %v510_v43 = vsel %vm1937_vm5, %v507_v21, %v504_v3  ;;  %v537_v12 = vsel %vm1949_vm7, %v534_v36, %v531_v54  ;;  %v364_v10 = vmax.f32 %v1841_v42, 0.0 }
  0x94   :  { %v376_v1 = vmul.f32 %v2338_v51, %v1841_v42  ;;  %v261_v44 = vsel %vm197_vm14, %v1786_v26, %v1413_v5  ;;  %v337_v2 = vsub.f32 %v325_v23, %v264_v25  ;;  %v557_v56 = vadd.f32 %v537_v12, %v389_v11 }
  0x95   :  { %vm1962_vm8 = vcmp.lt.f32.partialorder %v2335_v31, 0.0004427343  ;;  %1337 = vlog2.f32 %v520_v55  ;;  %v501_v53 = vsel %vm1945_vm6, %v498_v37, %v495_v46  ;;  %v267_v4 = vsel %vm197_vm14, %v1902_v18, %v2338_v51 }
  0x96   :  { %v1953_v33 = vpop.permute.xlu1 %603  ;;  %v1955_v57 = vpop.permute.xlu2 %678  ;;  %v328_v3 = vsel %vm318_vm12, %v315_v63, %v1841_v42  ;;  %v524_v21 = vadd.f32 1.0, %v523_v34  ;;  %v350_v36 = vmul.f32 %v338_v9, %v338_v9  ;;  %v554_v45 = vadd.f32 %v510_v43, %v1890_v59  ;;  %v1340_v63 = vld [vmem:[%s2293_s1] sm:$0xff] }
  0x97   :  { %v1958_v6 = vpop.permute.xlu0 %598  ;;  %v570_v5 = vsel %vm559_vm2, %v353_v14, %v557_v56  ;;  %v526_v26 = vand.u32 2147483647, %v1334_v52  ;;  %v333_v23 = vsub.f32 %v1706_v39, %v260_v0  ;;  %v2339_v18 = vsel %vm1868_vm4, %v1864_v13, %v1861_v58  ;;  %v1339_v39 = vld [vmem:[%s2293_s1 + $0x8] sm:$0xff] }
  0x98   :  { %v550_v11 = vadd.f32 %v2339_v18, %v1777_v48  ;;  %v453_v24 = vmul.f32 %v1878_v20, %v452_v19  ;;  %v1997_v42 = vand.u32 4294901760, %v570_v5  ;;  %v334_v25 = vsub.f32 %v1849_v35, %v261_v44 }
  0x99   :  { %v349_v59 = vmul.f32 %v337_v2, %v337_v2  ;;  %v553_v30 = vadd.f32 %v501_v53, %v1899_v47  ;;  %v340_v8 = vsub.f32 %v328_v3, %v267_v4  ;;  %v259_v48 = vsel %vm197_vm14, %v1788_v50, %v1339_v39 }
  0x9a   :  { %v450_v58 = vmul.f32 0.6931472, %v1336_v32  ;;  %v525_v19 = vmul.f32 %v1334_v52, %v524_v21  ;;  %771 = vmatpush.msra.mxu0 %v1997_v42  ;;  %935 = vmatpush.msra.mxu3 %v1997_v42  ;;  %v2012_v35 = vsub.f32 %v570_v5, %v1997_v42  ;;  %v2340_v47 = vand.u32 2147483647, %v1878_v20 }
  0x9b   :  { %v1338_v61 = vpop.eup %1337  ;;  %v567_v50 = vsel %vm559_vm2, %v350_v36, %v554_v45  ;;  %v388_v52 = vsub.f32 %v364_v10, %v376_v1  ;;  %vm2024_vm10 = vcmp.lt.f32.partialorder %v526_v26, 0.0004427343  ;;  %v258_v20 = vsel %vm197_vm14, %v1729_v17, %v1340_v63 }
  0x9c   :  { %vm2018_vm9 = vcmp.lt.f32.partialorder %v2340_v47, 0.0004427343  ;;  %v522_v9 = vmul.f32 0.6931472, %v1338_v61  ;;  %891 = vmatpush.msra.mxu2 %v2012_v35  ;;  %v2038_v14 = vand.u32 4294901760, %v1883_v7  ;;  %v813_v55 = vand.u32 4294901760, %v2012_v35 }
  0x9d   :  { %v346_v34 = vmul.f32 %v334_v25, %v334_v25  ;;  %v332_v32 = vsub.f32 %v1888_v60, %v259_v48  ;;  %v566_v31 = vsel %vm559_vm2, %v349_v59, %v553_v30  ;;  %v352_v43 = vmul.f32 %v340_v8, %v340_v8 }
  0x9e   :  { %v2001_v46 = vpop.permute.xlu1 %613  ;;  %v2028_v54 = vpop.permute.xlu2 %688  ;;  %v456_v12 = vsel %vm2018_vm9, %v453_v24, %v450_v58  ;;  %v528_v17 = vsel %vm2024_vm10, %v525_v19, %v522_v9  ;;  %v2048_v10 = vand.u32 4294901760, %v567_v50  ;;  %v814_v51 = vsub.f32 %v2012_v35, %v813_v55 }
  0x9f   :  { %v2014_v13 = vpop.permute.xlu0 %623  ;;  %v565_v60 = vsel %vm559_vm2, %v1831_v16, %v1754_v15  ;;  %v345_v1 = vmul.f32 %v333_v23, %v333_v23  ;;  %v447_v44 = vsel %vm1962_vm8, %v1844_v38, %v1875_v62  ;;  %v556_v2 = vadd.f32 %v528_v17, %v388_v52 }
  0xa0   :  { %v331_v56 = vsub.f32 %v1823_v22, %v258_v20  ;;  %v2064_v53 = vsub.f32 %v1883_v7, %v2038_v14  ;;  %v2066_v4 = vand.u32 4294901760, %v566_v31  ;;  %v815_v3 = vand.u32 4294901760, %v814_v51 }
  0xa1   :  { %v563_v21 = vsel %vm559_vm2, %v346_v34, %v550_v11  ;;  %v344_v15 = vmul.f32 %v332_v32, %v332_v32  ;;  %v548_v16 = vadd.f32 %v456_v12, %v1825_v28  ;;  %v569_v27 = vsel %vm559_vm2, %v352_v43, %v556_v2 }
  0xa2   :  { %v2073_v62 = vand.u32 4294901760, %v569_v27  ;;  %816 = vmatpush.msra.mxu1 %v815_v3  ;;  %v2076_v22 = vsub.f32 %v567_v50, %v2048_v10  ;;  %v2078_v7 = vand.u32 4294901760, %v565_v60  ;;  %v562_v28 = vsel %vm559_vm2, %v345_v1, %v1756_v40  ;;  %v2345_v50 = vld [vmem:[#allocation13_spill] sm:$0xff] }
  0xa3   :  { %v2094_v26 = vsub.f32 %v566_v31, %v2066_v4  ;;  %v2097_v23 = vand.u32 4294901760, %v1767_v29  ;;  %v343_v18 = vmul.f32 %v331_v56, %v331_v56  ;;  %v547_v11 = vadd.f32 %v447_v44, %v1762_v41 }
  0xa4   :  { %773 = vmatpush.msra.mxu0 %v2073_v62  ;;  %937 = vmatpush.msra.mxu3 %v2073_v62  ;;  %v2091_v5 = vsub.f32 %v569_v27, %v2073_v62  ;;  %v2101_v40 = vand.u32 4294901760, %v563_v21  ;;  %v561_v25 = vsel %vm559_vm2, %v344_v15, %v548_v16  ;;  %v2111_v30 = vsub.f32 %v565_v60, %v2078_v7 }
  0xa5   :  { %v831_v8 = vand.u32 4294901760, %v2076_v22  ;;  %v2115_v41 = vand.u32 4294901760, %v562_v28  ;;  %v2127_v58 = vsub.f32 %v1767_v29, %v2097_v23  ;;  %v837_v19 = vand.u32 4294901760, %v2094_v26 }
  0xa6   :  { %v659_v38 = vpop.permute.xlu1 %658  ;;  %v2103_v24 = vpop.permute.xlu2 %638  ;;  %775 = vmatpush.msra.mxu0 %v2038_v14  ;;  %894 = vmatpush.msra.mxu2 %v2091_v5  ;;  %v819_v59 = vand.u32 4294901760, %v2091_v5  ;;  %v560_v61 = vsel %vm559_vm2, %v343_v18, %v547_v11  ;;  %v2134_v47 = vsub.f32 %v563_v21, %v2101_v40  ;;  %v2136_v0 = vand.u32 4294901760, %v561_v25  ;;  %v2346_v11 = vld [vmem:[#allocation11_spill] sm:$0xff] }
  0xa7   :  { %v2080_v36 = vpop.permute.xlu0 %668  ;;  %v716_v45 = vsel %vm197_vm14, %v1958_v6, %v659_v38  ;;  %v825_v6 = vand.u32 4294901760, %v2064_v53  ;;  %939 = vmatpush.msra.mxu3 %v2038_v14  ;;  %v717_v52 = vsel %vm197_vm14, %v1953_v33, %v2345_v50  ;;  %v832_v37 = vsub.f32 %v2076_v22, %v831_v8 }
  0xa8   :  { %728 = vxpose.xlu1.b32.start [1/12] (short) (narrow) %v716_v45, 8  ;;  %777 = vmatpush.msra.mxu0 %v2048_v10  ;;  %v820_v39 = vsub.f32 %v2091_v5, %v819_v59  ;;  %v843_v63 = vand.u32 4294901760, %v2111_v30  ;;  %v2152_v9 = vsub.f32 %v562_v28, %v2115_v41  ;;  %v838_v34 = vsub.f32 %v2094_v26, %v837_v19 }
  0xa9   :  { %897 = vmatpush.msra.mxu2 %v2064_v53  ;;  %v826_v48 = vsub.f32 %v2064_v53, %v825_v6  ;;  %941 = vmatpush.msra.mxu3 %v2048_v10  ;;  %v2158_v32 = vand.u32 4294901760, %v560_v61  ;;  %v849_v31 = vand.u32 4294901760, %v2127_v58  ;;  %v833_v43 = vand.u32 4294901760, %v832_v37 }
  0xaa   :  { %779 = vmatpush.msra.mxu0 %v2066_v4  ;;  %v821_v29 = vand.u32 4294901760, %v820_v39  ;;  %v844_v12 = vsub.f32 %v2111_v30, %v843_v63  ;;  %v2168_v17 = vsub.f32 %v561_v25, %v2136_v0  ;;  %v855_v51 = vand.u32 4294901760, %v2134_v47  ;;  %v2347_v39 = vld [vmem:[#allocation10_spill] sm:$0xff] }
  0xab   :  { %900 = vmatpush.msra.mxu2 %v2076_v22  ;;  %943 = vmatpush.msra.mxu3 %v2066_v4  ;;  %v827_v33 = vand.u32 4294901760, %v826_v48  ;;  %v839_v1 = vand.u32 4294901760, %v838_v34  ;;  %v850_v44 = vsub.f32 %v2127_v58, %v849_v31  ;;  %v2180_v2 = vsub.f32 %v560_v61, %v2158_v32 }
  0xac   :  { %781 = vmatpush.msra.mxu0 %v2078_v7  ;;  %822 = vmatpush.msra.mxu1 %v821_v29  ;;  %v861_v56 = vand.u32 4294901760, %v2152_v9  ;;  %v845_v3 = vand.u32 4294901760, %v844_v12  ;;  %v856_v21 = vsub.f32 %v2134_v47, %v855_v51  ;;  %v867_v15 = vand.u32 4294901760, %v2168_v17 }
  0xad   :  { %903 = vmatpush.msra.mxu2 %v2094_v26  ;;  %945 = vmatpush.msra.mxu3 %v2078_v7  ;;  %v851_v27 = vand.u32 4294901760, %v850_v44  ;;  %v873_v45 = vand.u32 4294901760, %v2180_v2  ;;  %v718_v25 = vsel %vm197_vm14, %v2346_v11, %v2080_v36  ;;  %v2348_v48 = vand.u32 4294901760, %v2347_v39 }
  0xae   :  { %783 = vmatpush.msra.mxu0 %v2097_v23  ;;  %828 = vmatpush.msra.mxu1 %v827_v33  ;;  %v2173_v60 = vpop.permute.xlu2 %703  ;;  %v862_v38 = vsub.f32 %v2152_v9, %v861_v56  ;;  %v857_v28 = vand.u32 4294901760, %v856_v21  ;;  %v868_v18 = vsub.f32 %v2168_v17, %v867_v15  ;;  %v2349_v33 = vld [vmem:[#allocation9_spill] sm:$0xff]  ;;  %vm760_vm12 = vcmask 785408  }
  0xaf   :  { %v2148_v20 = vpop.permute.xlu0 %683  ;;  %906 = vmatpush.msra.mxu2 %v2111_v30  ;;  %947 = vmatpush.msra.mxu3 %v2097_v23  ;;  %v874_v50 = vsub.f32 %v2180_v2, %v873_v45 }
  0xb0   :  { %729 = vxpose.xlu1.b32.cont [2/12] (short) (narrow) %v717_v52, 8  ;;  %785 = vmatpush.msra.mxu0 %v2101_v40  ;;  %v863_v61 = vand.u32 4294901760, %v862_v38  ;;  %v869_v29 = vand.u32 4294901760, %v868_v18 }
  0xb1   :  { %834 = vmatpush.msra.mxu1 %v833_v43  ;;  %909 = vmatpush.msra.mxu2 %v2127_v58  ;;  %v875_v36 = vand.u32 4294901760, %v874_v50 }
  0xb2   :  { %949 = vmatpush.msra.mxu3 %v2101_v40  ;;  %787 = vmatpush.msra.mxu0 %v2115_v41 }
  0xb3   :  { %840 = vmatpush.msra.mxu1 %v839_v1  ;;  %912 = vmatpush.msra.mxu2 %v2134_v47 }
  0xb4   :  { %951 = vmatpush.msra.mxu3 %v2115_v41  ;;  %789 = vmatpush.msra.mxu0 %v2136_v0 }
  0xb5   :  { %846 = vmatpush.msra.mxu1 %v845_v3  ;;  %915 = vmatpush.msra.mxu2 %v2152_v9  ;;  %v674_v9 = vpop.permute.xlu1 %673 }
  0xb6   :  { %953 = vmatpush.msra.mxu3 %v2136_v0  ;;  %791 = vmatpush.msra.mxu0 %v2158_v32  ;;  %v2211_v52 = vpop.permute.xlu2 %653  ;;  %v719_v35 = vsel %vm197_vm14, %v2001_v46, %v674_v9 }
  0xb7   :  { %v2190_v16 = vpop.permute.xlu0 %633  ;;  %852 = vmatpush.msra.mxu1 %v851_v27  ;;  %918 = vmatpush.msra.mxu2 %v2168_v17 }
  0xb8   :  { %955 = vmatpush.msra.mxu3 %v2158_v32  ;;  %970 = vmatpush.msrb.mxu0 %v2348_v48 }
  0xb9   :  { %858 = vmatpush.msra.mxu1 %v857_v28  ;;  %921 = vmatpush.msra.mxu2 %v2180_v2 }
  0xba   :  { %730 = vxpose.xlu1.b32.cont [3/12] (short) (narrow) %v718_v25, 8  ;;  %974 = vmatpush.msrb.mxu0 %v813_v55 }
  0xbb   :  { %864 = vmatpush.msra.mxu1 %v863_v61 }
  0xbc   :  { %978 = vmatpush.msrb.mxu0 %v819_v59 }
  0xbd   :  { %870 = vmatpush.msra.mxu1 %v869_v29 }
  0xbe   :  { %982 = vmatpush.msrb.mxu0 %v825_v6  ;;  %v1054_v55 = vpop.permute.xlu2 %1053 }
  0xbf   :  { %v699_v37 = vpop.permute.xlu0 %698  ;;  %876 = vmatpush.msra.mxu1 %v875_v36 }
  0xc0   :  { %986 = vmatpush.msrb.mxu0 %v831_v8  ;;  %v724_v34 = vsel %vm197_vm14, %v2103_v24, %v699_v37 }
  0xc1   :  { %1025 = vmatpush.msrb.mxu1 %v2349_v33 }
  0xc2   :  { %731 = vxpose.xlu1.b32.cont [4/12] (short) (narrow) %v719_v35, 8  ;;  %990 = vmatpush.msrb.mxu0 %v837_v19 }
  0xc3   :  { %1027 = vmatpush.msrb.mxu1 %v1997_v42  ;;  %v2350_v42 = vld [vmem:[#allocation12_spill] sm:$0xff] }
  0xc4   :  { %994 = vmatpush.msrb.mxu0 %v843_v63  ;;  %v720_v46 = vsel %vm197_vm14, %v2350_v42, %v1955_v57  ;;  %v721_v57 = vsel %vm197_vm14, %v2014_v13, %v2148_v20 }
  0xc5   :  { %1029 = vmatpush.msrb.mxu1 %v2073_v62  ;;  %v629_v62 = vpop.permute.xlu1 %628 }
  0xc6   :  { %998 = vmatpush.msrb.mxu0 %v849_v31  ;;  %v722_v13 = vsel %vm197_vm14, %v629_v62, %v2028_v54 }
  0xc7   :  { %v2228_v5 = vpop.permute.xlu0 %648  ;;  %1031 = vmatpush.msrb.mxu1 %v2038_v14  ;;  %v1058_v14 = vpop.permute.xlu2 %1057 }
  0xc8   :  { %1002 = vmatpush.msrb.mxu0 %v855_v51 }
  0xc9   :  { %1033 = vmatpush.msrb.mxu1 %v2048_v10  ;;  %v1090_v10 = vsel %vm1089_vm11, %v1054_v55, 0.0 }
  0xca   :  { %732 = vxpose.xlu1.b32.cont [5/12] (short) (narrow) %v720_v46, 8  ;;  %1006 = vmatpush.msrb.mxu0 %v861_v56 }
  0xcb   :  { %1035 = vmatpush.msrb.mxu1 %v2066_v4 }
  0xcc   :  { %1010 = vmatpush.msrb.mxu0 %v867_v15 }
  0xcd   :  { %1037 = vmatpush.msrb.mxu1 %v2078_v7  ;;  %v694_v30 = vpop.permute.xlu1 %693 }
  0xce   :  { %1014 = vmatpush.msrb.mxu0 %v873_v45  ;;  %v723_v19 = vsel %vm197_vm14, %v2190_v16, %v694_v30 }
  0xcf   :  { %v714_v53 = vpop.permute.xlu0 %713  ;;  %1039 = vmatpush.msrb.mxu1 %v2097_v23  ;;  %v1062_v26 = vpop.permute.xlu2 %1061  ;;  %v1093_v23 = vsel %vm1089_vm11, %v1058_v14, 0.0 }
  0xd0   :  { %v727_v18 = vsel %vm197_vm14, %v2211_v52, %v714_v53 }
  0xd1   :  { %1041 = vmatpush.msrb.mxu1 %v2101_v40 }
  0xd2   :  { %733 = vxpose.xlu1.b32.cont [6/12] (short) (narrow) %v721_v57, 8 }
  0xd3   :  { %1043 = vmatpush.msrb.mxu1 %v2115_v41  ;;  %v1097_v41 = vsel %vm1089_vm11, %v1062_v26, 0.0 }
  0xd5   :  { %1045 = vmatpush.msrb.mxu1 %v2136_v0  ;;  %v644_v43 = vpop.permute.xlu1 %643 }
  0xd6   :  { %v725_v44 = vsel %vm197_vm14, %v644_v43, %v2173_v60 }
  0xd7   :  { %v1056_v4 = vpop.permute.xlu0 %1055  ;;  %1047 = vmatpush.msrb.mxu1 %v2158_v32  ;;  %v1066_v58 = vpop.permute.xlu2 %1065 }
  0xd8   :  { %v1091_v22 = vsel %vm1089_vm11, %v1056_v4, 0.0  ;;  %v1101_v20 = vsel %vm1089_vm11, %v1066_v58, 0.0 }
  0xd9   :  { %v1092_v7 = vadd.f32 %v1091_v22, %v1090_v10  ;;  %v2351_v10 = vlaneseq }
  0xda   :  { %734 = vxpose.xlu1.b32.cont [7/12] (short) (narrow) %v722_v13, 8 }
  0xdb   :  { %v1094_v6 = vadd.f32 %v1093_v23, %v1092_v7  ;;  %v86_v4 = vshrl.u32 %v2351_v10, 7 }
  0xdd   :  { %v709_v21 = vpop.permute.xlu1 %708  ;;  %vm1122_vm15 = vcmp.eq.s32.totalorder %v86_v4, 1 }
  0xde   :  { %v726_v27 = vsel %vm197_vm14, %v2228_v5, %v709_v21  ;;  %v1370_v5 = vmov 0.0   ;;  %vm1123_vm0 = vmand %vm1122_vm15, %vm197_vm14 }
  0xdf   :  { %v1060_v40 = vpop.permute.xlu0 %1059  ;;  %v1070_v31 = vpop.permute.xlu2 %1069  ;;  %81 = vst.msk [vmem:[#allocation2] sm:$0x3] %vm80_vm13, %v1370_v5 }
  0xe0   :  { %v1095_v59 = vsel %vm1089_vm11, %v1060_v40, 0.0  ;;  %v1105_v1 = vsel %vm1089_vm11, %v1070_v31, 0.0 }
  0xe1   :  { %v1096_v8 = vadd.f32 %v1095_v59, %v1094_v6 }
  0xe2   :  { %735 = vxpose.xlu1.b32.cont [8/12] (short) (narrow) %v723_v19, 8 }
  0xe3   :  { %v1098_v47 = vadd.f32 %v1097_v41, %v1096_v8 }
  0xe6   :  { %v1126_v6 = vld [vmem:[#allocation2] sm:$0x3] }
  0xe7   :  { %v1064_v0 = vpop.permute.xlu0 %1063  ;;  %v1074_v3 = vpop.permute.xlu2 %1073 }
  0xe8   :  { %v1099_v63 = vsel %vm1089_vm11, %v1064_v0, 0.0  ;;  %v1109_v16 = vsel %vm1089_vm11, %v1074_v3, 0.0 }
  0xe9   :  { %v1100_v54 = vadd.f32 %v1099_v63, %v1098_v47 }
  0xea   :  { %736 = vxpose.xlu1.b32.cont [9/12] (short) (narrow) %v724_v34, 8 }
  0xeb   :  { %v1102_v32 = vadd.f32 %v1101_v20, %v1100_v54 }
  0xf0   :  { %v1068_v12 = vpop.permute.xlu0 %1067 }
  0xf1   :  { %v1103_v17 = vsel %vm1089_vm11, %v1068_v12, 0.0 }
  0xf2   :  { %v1104_v51 = vadd.f32 %v1103_v17, %v1102_v32  ;;  %737 = vxpose.xlu1.b32.cont [10/12] (short) (narrow) %v725_v44, 8 }
  0xf4   :  { %v1106_v2 = vadd.f32 %v1105_v1, %v1104_v51 }
  0xf8   :  { %v1072_v56 = vpop.permute.xlu0 %1071 }
  0xf9   :  { %v1107_v24 = vsel %vm1089_vm11, %v1072_v56, 0.0 }
  0xfa   :  { %v1108_v15 = vadd.f32 %v1107_v24, %v1106_v2  ;;  %738 = vxpose.xlu1.b32.cont [11/12] (short) (narrow) %v726_v27, 8 }
  0xfc   :  { %v1110_v38 = vadd.f32 %v1109_v16, %v1108_v15 }
 0x100   :  { %v1076_v45 = vpop.permute.xlu0 %1075 }
 0x101   :  { %v1111_v28 = vsel %vm1089_vm11, %v1076_v45, 0.0 }
 0x102   :  { %v1112_v60 = vadd.f32 %v1111_v28, %v1110_v38  ;;  %739 = vxpose.xlu1.b32.end [12/12] (short) (narrow) %v727_v18, 8 }
 0x104   :  { %1113 = vadd.xlane.f32.xlu2 %v1112_v60 }
 0x14e   :  { %v744_v11 = vpop.trf.xlu1 }
 0x14f   :  { %v762_v25 = vsel %vm760_vm12, %v744_v11, 0 }
 0x150   :  { %v792_v39 = vand.u32 4294901760, %v762_v25 }
 0x152   :  { %v793_v48 = vsub.f32 %v762_v25, %v792_v39  ;;  %878 = vmatmul.f32.vlgmr.msra.gmra.mxu1 %v792_v39 }
 0x154   :  { %924 = vmatmul.f32.vlgmr.msra.gmra.mxu2 %v793_v48  ;;  %v794_v61 = vand.u32 4294901760, %v793_v48 }
 0x156   :  { %959 = vmatmul.f32.vlgmr.msra.gmra.mxu3 %v794_v61  ;;  %v795_v50 = vsub.f32 %v793_v48, %v794_v61 }
 0x158   :  { %v796_v29 = vand.u32 4294901760, %v795_v50 }
 0x15a   :  { %797 = vmatmul.f32.vlgmr.msra.gmra.mxu0 %v796_v29  ;;  %1049 = vmatmul.f32.vlgmr.msrb.gmra.mxu1 %v792_v39 }
 0x162   :  { %1016 = vmatmul.f32.vlgmr.msrb.gmra.mxu0 %v792_v39 }
 0x177   :  { %v1114_v37 = vpop.xlane.xlu2 %1113 }
 0x178   :  { %v1115_v36 = vrot.slane %v1114_v37, 4 }
 0x17a   :  { %v1116_v9 = vadd.f32 %v1115_v36, %v1114_v37 }
 0x17c   :  { %v1117_v33 = vrot.slane %v1116_v9, 2 }
 0x17e   :  { %v1118_v52 = vadd.f32 %v1117_v33, %v1116_v9 }
 0x180   :  { %v1119_v35 = vrot.slane %v1118_v52, 1 }
 0x182   :  { %v1120_v55 = vadd.f32 %v1119_v35, %v1118_v52 }
 0x184   :  { %1254 = vpush %v1120_v55 }
 0x1b5   :  { %s1255_s1 = spop %1254 }
 0x1b6   :  { %v1124_v40 = vstv %s1255_s1 }
 0x1cf   :  { %v879_v42 = vpop.f32.mrf.mxu1 }
 0x1d7   :  { %v798_v46 = vpop.f32.mrf.mxu0  ;;  %v925_v14 = vpop.f32.mrf.mxu2 }
 0x1d8   :  { %v880_v53 = vadd.f32 %v879_v42, %v798_v46  ;;  %v1050_v23 = vpop.f32.mrf.mxu1 }
 0x1d9   :  { %v960_v62 = vpop.f32.mrf.mxu3 }
 0x1da   :  { %v926_v57 = vadd.f32 %v925_v14, %v880_v53 }
 0x1dc   :  { %v961_v22 = vadd.f32 %v960_v62, %v926_v57 }
 0x1df   :  { %v1017_v7 = vpop.f32.mrf.mxu0 }
 0x1e0   :  { %v1018_v26 = vadd.f32 %v1017_v7, %v961_v22 }
 0x1e2   :  { %v1051_v13 = vadd.f32 %v1050_v23, %v1018_v26 }
 0x1e4   :  { %v1125_v59 = vsel %vm1123_vm0, %v1124_v40, %v1051_v13 }
 0x1e5   :  { %v1127_v30 = vadd.f32 %v1126_v6, %v1125_v59 }
 0x1e7   :  { %1129 = vst.msk [vmem:[#allocation2] sm:$0x3] %vm80_vm13, %v1127_v30 }
 0x1e8   :  { %1140 = dma.vmem_to_hbm [thread:$0]  %s1136_s6, 32, %s1138_s9, [#allocation3]  }
 0x1e9   :  { %1365 = dma.done.wait [#allocation3], 32  }
 0x1ea   :  { %1366 = vsyncadd [#allocation3], 4294967264 }
 0x1eb   :  { %1145 = vsyncpa [#allocation3], 1 }

</bundles_post_ra>
